<compile_context>
chip_gen: v5e
topology: v5e:2x2
jax: 0.10.0
libtpu: 0.0.40
codegen_flags: <defaults>
</compile_context>

<pallas_src>
import functools
import numpy as np

import jax
import jax.numpy as jnp
from jax.experimental import pallas as pl
from jax.experimental.pallas import tpu as pltpu


def shrink_dim(x2, x1):
    """Mirror of the PyTorch helper: center-crop x2's last dim to x1's."""
    if x2.shape[-1] > x1.shape[-1]:
        x2 = x2[..., (x2.shape[-1] - x1.shape[-1]) // 2:
                     -(x2.shape[-1] - x1.shape[-1]) // 2]
    return x2


# ----------------------------------------------------------------------------
# Pallas kernel: row-wise LayerNorm over the last (lane) dimension.
#   y[r, :] = gamma * (x[r, :] - mean_r) / (std_r + eps) + beta
# ----------------------------------------------------------------------------
def _layernorm_kernel(x_ref, g_ref, b_ref, o_ref, *, eps, features):
    x = x_ref[...].astype(jnp.float32)                        # (TR, F)
    mean = jnp.mean(x, axis=-1, keepdims=True)                # (TR, 1) XLU reduce
    xc = x - mean
    # torch.Tensor.std defaults to the unbiased estimator (ddof = 1).
    # features == 1 -> 0/0 -> NaN, matching torch.
    var = jnp.sum(xc * xc, axis=-1, keepdims=True) / jnp.float32(features - 1)
    std = jnp.sqrt(var)
    inv = pl.reciprocal(std + eps, approx=False)              # exact 1/(std+eps)
    y = g_ref[...] * (xc * inv) + b_ref[...]                  # broadcast (1, F)
    o_ref[...] = y.astype(o_ref.dtype)


def _pick_row_tile(rows, features, itemsize, target_bytes, min_grid=8):
    """Dtype-aware, VMEM-budgeted row tile that keeps the grid pipelined."""
    align = {1: 32, 2: 16, 4: 8}.get(itemsize, 8)
    if rows <= align:
        return rows                               # single full-extent block
    # Bytes-targeted tile, sublane-aligned for this dtype.
    tr = max(align, (target_bytes // (itemsize * features)) // align * align)
    # Keep >= min_grid steps when rows permit (double-buffering + 2 TCs on v7x).
    cap = (((rows + min_grid - 1) // min_grid) + align - 1) // align * align
    tr = min(tr, max(align, cap))
    if tr >= rows:
        return rows
    return tr


def layernorm_pallas(x, gamma, beta, eps=1e-6, *, row_block_bytes=2 << 20):
    """x: (..., F); gamma/beta: (F',) with F' >= F (center-cropped like torch)."""
    gamma = shrink_dim(gamma, x)
    beta = shrink_dim(beta, x)

    orig_shape = x.shape
    features = orig_shape[-1]
    rows = int(np.prod(orig_shape[:-1])) if len(orig_shape) > 1 else 1
    x2 = x.reshape(rows, features)                # keep native dtype in HBM

    itemsize = jnp.dtype(x.dtype).itemsize
    tr = _pick_row_tile(rows, features, itemsize, row_block_bytes)
    grid_len = (rows + tr - 1) // tr              # ragged last block OK (row-indep.)

    g2 = gamma.reshape(1, features).astype(jnp.float32)
    b2 = beta.reshape(1, features).astype(jnp.float32)

    # 2x(in) + 2x(out) double buffers + resident gamma/beta, with headroom.
    block_bytes = tr * features * itemsize
    vmem_limit = int(min(100 << 20, max(32 << 20, 6 * block_bytes)))

    # TODO(synk): if features were small (<128) or not a multiple of 128, pack
    # multiple rows per 128-lane row / pad F with a static reduction mask to
    # keep stores lane-dense; not needed for the shapes used here.
    out = pl.pallas_call(
        functools.partial(_layernorm_kernel, eps=float(eps), features=features),
        out_shape=jax.ShapeDtypeStruct((rows, features), x.dtype),
        grid=(grid_len,),
        in_specs=[
            pl.BlockSpec((tr, features), lambda i: (i, 0)),    # x row tile
            pl.BlockSpec((1, features), lambda i: (0, 0)),     # gamma (resident)
            pl.BlockSpec((1, features), lambda i: (0, 0)),     # beta  (resident)
        ],
        out_specs=pl.BlockSpec((tr, features), lambda i: (i, 0)),
        compiler_params=pltpu.CompilerParams(
            dimension_semantics=("parallel",),
            vmem_limit_bytes=vmem_limit),
    )(x2, g2, b2)

    return out.reshape(orig_shape)


def _ref_layernorm(x, gamma, beta, eps):
    xf = x.astype(jnp.float32)
    mean = jnp.mean(xf, -1, keepdims=True)
    std = jnp.std(xf, -1, keepdims=True, ddof=1)
    return (shrink_dim(gamma, x).astype(jnp.float32) * (xf - mean) / (std + eps)
            + shrink_dim(beta, x).astype(jnp.float32))


if __name__ == "__main__":
    key = jax.random.PRNGKey(0)
    k1, k2, k3, k4, k5 = jax.random.split(key, 5)

    # Small shapes consistent with the module: normalize over the last dim.
    batch, channels, features = 2, 4, 256
    eps = 1e-6

    x = jax.random.normal(k1, (batch, channels, features), dtype=jnp.float32)
    gamma = 1.0 + 0.1 * jax.random.normal(k2, (features,), dtype=jnp.float32)
    beta = 0.1 * jax.random.normal(k3, (features,), dtype=jnp.float32)

    out = jax.block_until_ready(layernorm_pallas(x, gamma, beta, eps))
    assert out.shape == x.shape
    np.testing.assert_allclose(np.asarray(out),
                               np.asarray(_ref_layernorm(x, gamma, beta, eps)),
                               rtol=1e-4, atol=1e-4)

    # shrink_dim path: parameters wider than x's last dim get center-cropped.
    features_wide = features + 6
    gamma_w = 1.0 + 0.1 * jax.random.normal(k4, (features_wide,),
                                            dtype=jnp.float32)
    beta_w = jnp.zeros((features_wide,), jnp.float32)
    out_w = jax.block_until_ready(layernorm_pallas(x, gamma_w, beta_w, eps))
    np.testing.assert_allclose(np.asarray(out_w),
                               np.asarray(_ref_layernorm(x, gamma_w, beta_w, eps)),
                               rtol=1e-4, atol=1e-4)

    # Ragged-grid path (rows % tr != 0): no wrapper pad/slice, OOB rows dropped.
    x_rag = jax.random.normal(k5, (5, 3, features), dtype=jnp.float32)
    out_rag = jax.block_until_ready(
        layernorm_pallas(x_rag, gamma, beta, eps, row_block_bytes=8 * features * 4))
    np.testing.assert_allclose(np.asarray(out_rag),
                               np.asarray(_ref_layernorm(x_rag, gamma, beta, eps)),
                               rtol=1e-4, atol=1e-4)

    # bf16 path: HBM traffic stays bf16, math in f32 inside the kernel.
    x_bf = jax.random.normal(k1, (48, features), dtype=jnp.bfloat16)
    out_bf = jax.block_until_ready(layernorm_pallas(x_bf, gamma, beta, eps))
    np.testing.assert_allclose(np.asarray(out_bf, dtype=np.float32),
                               np.asarray(_ref_layernorm(x_bf, gamma, beta, eps)),
                               rtol=5e-2, atol=5e-2)

    print("KERNEL_OK")
</pallas_src>

<mosaic_0001>
module attributes {stable_mosaic.version = 11 : i64} {
  func.func @_layernorm_kernel(%arg0: i32, %arg1: memref<8x256xf32, #tpu.memory_space<vmem>>, %arg2: memref<1x256xf32, #tpu.memory_space<vmem>>, %arg3: memref<1x256xf32, #tpu.memory_space<vmem>>, %arg4: memref<8x256xf32, #tpu.memory_space<vmem>>) attributes {dimension_semantics = [#tpu.dimension_semantics<parallel>], iteration_bounds = array<i64: 1>, scalar_prefetch = 0 : i64, scratch_operands = 0 : i64, tpu.core_type = #tpu.core_type<tc>, window_params = [{transform_indices = @transform_0, window_bounds = array<i64: 8, 256>}, {pipeline_mode = #tpu.pipeline_mode<synchronous>, transform_indices = @transform_1, window_bounds = array<i64: 1, 256>}, {pipeline_mode = #tpu.pipeline_mode<synchronous>, transform_indices = @transform_2, window_bounds = array<i64: 1, 256>}, {transform_indices = @transform_3, window_bounds = array<i64: 8, 256>}]} {
    %c0 = arith.constant 0 : index
    %c0_0 = arith.constant 0 : index
    %0 = vector.load %arg1[%c0, %c0_0] : memref<8x256xf32, #tpu.memory_space<vmem>>, vector<8x256xf32>
    %cst = arith.constant dense<0.000000e+00> : vector<8xf32>
    %1 = vector.multi_reduction <add>, %0, %cst [1] : vector<8x256xf32> to vector<8xf32>
    %2 = vector.shape_cast %1 : vector<8xf32> to vector<8x1xf32>
    %cst_1 = arith.constant 2.560000e+02 : f32
    %3 = vector.broadcast %cst_1 : f32 to vector<8x1xf32>
    %4 = arith.divf %2, %3 : vector<8x1xf32>
    %5 = vector.broadcast %4 : vector<8x1xf32> to vector<8x256xf32>
    %6 = arith.subf %0, %5 : vector<8x256xf32>
    %7 = arith.mulf %6, %6 : vector<8x256xf32>
    %cst_2 = arith.constant dense<0.000000e+00> : vector<8xf32>
    %8 = vector.multi_reduction <add>, %7, %cst_2 [1] : vector<8x256xf32> to vector<8xf32>
    %9 = vector.shape_cast %8 : vector<8xf32> to vector<8x1xf32>
    %cst_3 = arith.constant 2.550000e+02 : f32
    %10 = vector.broadcast %cst_3 : f32 to vector<8x1xf32>
    %11 = arith.divf %9, %10 : vector<8x1xf32>
    %12 = math.sqrt %11 : vector<8x1xf32>
    %cst_4 = arith.constant 9.99999997E-7 : f32
    %13 = vector.broadcast %cst_4 : f32 to vector<8x1xf32>
    %14 = arith.addf %12, %13 : vector<8x1xf32>
    %15 = tpu.reciprocal %14 : vector<8x1xf32> -> vector<8x1xf32>
    %c0_5 = arith.constant 0 : index
    %c0_6 = arith.constant 0 : index
    %16 = vector.load %arg2[%c0_5, %c0_6] : memref<1x256xf32, #tpu.memory_space<vmem>>, vector<1x256xf32>
    %17 = vector.broadcast %15 : vector<8x1xf32> to vector<8x256xf32>
    %18 = arith.mulf %6, %17 : vector<8x256xf32>
    %19 = vector.broadcast %16 : vector<1x256xf32> to vector<8x256xf32>
    %20 = arith.mulf %19, %18 : vector<8x256xf32>
    %c0_7 = arith.constant 0 : index
    %c0_8 = arith.constant 0 : index
    %21 = vector.load %arg3[%c0_7, %c0_8] : memref<1x256xf32, #tpu.memory_space<vmem>>, vector<1x256xf32>
    %22 = vector.broadcast %21 : vector<1x256xf32> to vector<8x256xf32>
    %23 = arith.addf %20, %22 : vector<8x256xf32>
    %c0_9 = arith.constant 0 : index
    %c0_10 = arith.constant 0 : index
    %24 = vector.load %arg4[%c0_9, %c0_10] : memref<8x256xf32, #tpu.memory_space<vmem>>, vector<8x256xf32>
    tpu.vector_store %arg4[%c0_9, %c0_10], %23 {strides = array<i32>} : memref<8x256xf32, #tpu.memory_space<vmem>>, vector<8x256xf32>,
    return
  }
  func.func @transform_0(%arg0: i32) -> (i32, i32) {
    %c0_i32 = arith.constant 0 : i32
    %c0_i32_0 = arith.constant 0 : i32
    return %arg0, %c0_i32 : i32, i32
  }
  func.func @transform_1(%arg0: i32) -> (i32, i32) {
    %c0_i32 = arith.constant 0 : i32
    %c0_i32_0 = arith.constant 0 : i32
    %c0_i32_1 = arith.constant 0 : i32
    return %c0_i32, %c0_i32_0 : i32, i32
  }
  func.func @transform_2(%arg0: i32) -> (i32, i32) {
    %c0_i32 = arith.constant 0 : i32
    %c0_i32_0 = arith.constant 0 : i32
    %c0_i32_1 = arith.constant 0 : i32
    return %c0_i32, %c0_i32_0 : i32, i32
  }
  func.func @transform_3(%arg0: i32) -> (i32, i32) {
    %c0_i32 = arith.constant 0 : i32
    %c0_i32_0 = arith.constant 0 : i32
    return %arg0, %c0_i32 : i32, i32
  }
}

</mosaic_0001>

<bundles_post_ra>
// kernel: tpu_custom_call.1
= control target key start
LH: loop header
LB: loop body
LE: loop exit
PB: predicated region body
PF: predicated region fallthrough
CT: control target
= control target key end

     0   :  { %8 = vsyncpa [#allocation3], 0  ;;  %s303_s0 = inlined_call_operand.hbm [shape: f32[8,256], index: 0, kind: input, shape index: {}]   ;;  %s304_s1 = inlined_call_operand.hbm [shape: f32[1,256], index: 1, kind: input, shape index: {}]   ;;  %s305_s2 = inlined_call_operand.hbm [shape: f32[1,256], index: 2, kind: input, shape index: {}]   ;;  %s306_s3 = inlined_call_operand.hbm [shape: f32[8,256], index: 3, kind: output, shape index: {}]  }
   0x1   :  { %9 = vsyncpa [#allocation6], 0  ;;  %s27_s14 = sshll.u32 %s304_s1, 4  ;;  %s28_s14 = int_to_ptr.hbm [resolvable:$true] %s27_s14 }
   0x2   :  { %10 = vsyncpa [#allocation4], 0  ;;  %s265_s15 = smov [#allocation5]   ;;  %s16_s19 = sshll.u32 %s303_s0, 4  ;;  %s17_s19 = int_to_ptr.hbm [resolvable:$true] %s16_s19 }
   0x3   :  { %s29_s16 = sshll.u32 %s265_s15, 4  ;;  %s266_s20 = smov [#allocation2]   ;;  %s30_s16 = int_to_ptr.vmem [resolvable:$true] %s29_s16 }
   0x4   :  { %32 = dma.hbm_to_vmem [thread:$0]  %s28_s14, 32, %s30_s16, [#allocation6]  }
   0x5   :  { %s18_s21 = sshll.u32 %s266_s20, 4  ;;  %s38_s24 = sshll.u32 %s305_s2, 4  ;;  %s19_s21 = int_to_ptr.vmem [resolvable:$true] %s18_s21  ;;  %s39_s24 = int_to_ptr.hbm [resolvable:$true] %s38_s24 }
   0x6   :  { %21 = dma.hbm_to_vmem [thread:$0]  %s17_s19, 256, %s19_s21, [#allocation3]  }
   0x7   :  { %s267_s1 = smov [#allocation7]  }
   0x8   :  { %s40_s25 = sshll.u32 %s267_s1, 4  ;;  %s41_s25 = int_to_ptr.vmem [resolvable:$true] %s40_s25 }
   0x9   :  { %43 = dma.hbm_to_vmem [thread:$0]  %s39_s24, 32, %s41_s25, [#allocation6]  }
   0xa   :  { %259 = dma.done.wait [#allocation3], 256  }
   0xb   :  { %260 = vsyncadd [#allocation3], 4294967040 }
   0xc   :  { %261 = dma.done.wait [#allocation6], 64  }
   0xd   :  { %262 = vsyncadd [#allocation6], 4294967232  ;;  %v56_v0 = vld [vmem:[#allocation2] sm:$0xff]  ;;  %v57_v1 = vld [vmem:[#allocation2 + $0x8] sm:$0xff]  ;;  %v268_v3 = vmov 256.0   ;;  %v269_v17 = vmov 255.0  }
   0xe   :  { %v58_v2 = vadd.f32 %v57_v1, %v56_v0  ;;  %155 = vrcp.f32 %v268_v3  ;;  %v111_v43 = vld [vmem:[#allocation5] sm:$0x3]  ;;  %v121_v46 = vld [vmem:[#allocation7] sm:$0x3]  ;;  %s270_s0 = smov [#allocation8]   ;;  %s138_s28 = sshll.u32 %s306_s3, 4  ;;  %s139_s28 = int_to_ptr.hbm [resolvable:$true] %s138_s28 }
   0xf   :  { %157 = vrcp.f32 %v269_v17  ;;  %v115_v48 = vperm.slane %v111_v43, 0  ;;  %v116_v49 = vperm.slane %v111_v43, 1  ;;  %v123_v53 = vperm.slane %v121_v46, 0  ;;  %s136_s2 = sshll.u32 %s270_s0, 4  ;;  %s137_s2 = int_to_ptr.vmem [resolvable:$true] %s136_s2 }
  0x10   :  { %59 = vadd.xlane.f32.xlu0 %v58_v2  ;;  %v124_v54 = vperm.slane %v121_v46, 1 }
  0x14   :  { %v156_v4 = vpop.eup %155 }
  0x15   :  { %v62_v5 = vmul.f32 256.0, %v156_v4  ;;  %vm66_vm0 = vweird.f32 %v156_v4  ;;  %v158_v18 = vpop.eup %157 }
  0x16   :  { %v77_v19 = vmul.f32 255.0, %v158_v18  ;;  %vm81_vm1 = vweird.f32 %v158_v18 }
  0x17   :  { %v63_v6 = vsub.f32 1.0, %v62_v5 }
  0x18   :  { %v78_v20 = vsub.f32 1.0, %v77_v19 }
  0x19   :  { %v64_v7 = vmul.f32 %v156_v4, %v63_v6 }
  0x1a   :  { %v79_v21 = vmul.f32 %v158_v18, %v78_v20 }
  0x1b   :  { %v65_v8 = vadd.f32 %v156_v4, %v64_v7 }
  0x1c   :  { %v80_v22 = vadd.f32 %v158_v18, %v79_v21 }
  0x1d   :  { %v67_v9 = vsel %vm66_vm0, %v156_v4, %v65_v8 }
  0x1e   :  { %v82_v23 = vsel %vm81_vm1, %v158_v18, %v80_v22 }
  0x83   :  { %v60_v10 = vpop.xlane.xlu0 %59 }
  0x84   :  { %v68_v11 = vmul.f32 %v67_v9, %v60_v10 }
  0x86   :  { %v69_v12 = vsub.f32 %v56_v0, %v68_v11  ;;  %v70_v13 = vsub.f32 %v57_v1, %v68_v11 }
  0x88   :  { %v71_v14 = vmul.f32 %v69_v12, %v69_v12  ;;  %v72_v15 = vmul.f32 %v70_v13, %v70_v13 }
  0x8a   :  { %v73_v16 = vadd.f32 %v72_v15, %v71_v14 }
  0x8c   :  { %74 = vadd.xlane.f32.xlu0 %v73_v16 }
  0xff   :  { %v75_v24 = vpop.xlane.xlu0 %74 }
 0x100   :  { %v83_v25 = vmul.f32 %v82_v23, %v75_v24 }
 0x102   :  { %159 = vrsqrt.f32 %v83_v25  ;;  %vm91_vm2 = vcmp.eq.f32.partialorder %v83_v25, inf  ;;  %v94_v33 = vand.u32 2147483648, %v83_v25  ;;  %vm93_vm3 = vcmp.eq.f32.partialorder %v83_v25, 0.0 }
 0x108   :  { %v160_v26 = vpop.eup %159 }
 0x109   :  { %v85_v27 = vmul.f32 %v160_v26, %v83_v25 }
 0x10b   :  { %v86_v28 = vmul.f32 %v160_v26, %v85_v27 }
 0x10d   :  { %v87_v29 = vmul.f32 0.5, %v86_v28 }
 0x10f   :  { %v88_v30 = vsub.f32 1.5, %v87_v29 }
 0x111   :  { %v89_v31 = vmul.f32 %v160_v26, %v88_v30 }
 0x113   :  { %v90_v32 = vmul.f32 %v89_v31, %v83_v25 }
 0x115   :  { %v92_v34 = vsel %vm91_vm2, %v83_v25, %v90_v32 }
 0x116   :  { %v95_v35 = vsel %vm93_vm3, %v94_v33, %v92_v34 }
 0x117   :  { %v96_v36 = vadd.f32 1e-06, %v95_v35 }
 0x119   :  { %161 = vrcp.f32 %v96_v36  ;;  %v108_v40 = vand.u32 2147483648, %v96_v36  ;;  %v106_v42 = vand.u32 2147483647, %v96_v36  ;;  %vm102_vm5 = vweird.f32 %v96_v36 }
 0x11b   :  { %v109_v45 = vor.u32 1.1754944e-38, %v108_v40  ;;  %vm107_vm7 = vcmp.eq.f32.partialorder %v106_v42, 8.507059e+37 }
 0x11f   :  { %v162_v37 = vpop.eup %161 }
 0x120   :  { %v98_v38 = vmul.f32 %v162_v37, %v96_v36  ;;  %vm103_vm4 = vweird.f32 %v162_v37 }
 0x121   :  { %vm104_vm6 = vmor %vm102_vm5, %vm103_vm4 }
 0x122   :  { %v99_v39 = vsub.f32 1.0, %v98_v38 }
 0x124   :  { %v100_v41 = vmul.f32 %v162_v37, %v99_v39 }
 0x126   :  { %v101_v44 = vadd.f32 %v162_v37, %v100_v41 }
 0x128   :  { %v105_v47 = vsel %vm104_vm6, %v162_v37, %v101_v44 }
 0x129   :  { %v110_v50 = vsel %vm107_vm7, %v109_v45, %v105_v47 }
 0x12a   :  { %v112_v51 = vmul.f32 %v110_v50, %v69_v12  ;;  %v113_v52 = vmul.f32 %v110_v50, %v70_v13 }
 0x12c   :  { %v119_v55 = vmul.f32 %v115_v48, %v112_v51  ;;  %v120_v56 = vmul.f32 %v116_v49, %v113_v52 }
 0x12e   :  { %v127_v57 = vadd.f32 %v123_v53, %v119_v55  ;;  %v128_v58 = vadd.f32 %v124_v54, %v120_v56 }
 0x130   :  { %129 = vst [vmem:[#allocation8] sm:$0xff] %v127_v57 }
 0x131   :  { %130 = vst [vmem:[#allocation8 + $0x8] sm:$0xff] %v128_v58 }
 0x132   :  { %141 = dma.vmem_to_hbm [thread:$0]  %s137_s2, 256, %s139_s28, [#allocation4]  }
 0x133   :  { %263 = dma.done.wait [#allocation4], 256  }
 0x134   :  { %264 = vsyncadd [#allocation4], 4294967040 }
 0x135   :  { %146 = vsyncpa [#allocation3], 1 }
 0x136   :  { %147 = vsyncpa [#allocation6], 1 }
 0x137   :  { %148 = vsyncpa [#allocation4], 1 }

</bundles_post_ra>
